<compile_context>
chip_gen: v7x
topology: tpu7x:2x2x1
jax: 0.10.0
libtpu: 0.0.40
codegen_flags: <defaults>
</compile_context>

<pallas_src>
import jax
import jax.numpy as jnp
from jax.experimental import pallas as pl
from jax.experimental.pallas import tpu as pltpu


# ------------------- scaled-down GPT config (toy shapes) --------------------
CFG = {
    "vocab_size": 512,       # scaled down from 50257
    "context_length": 64,    # scaled down from 1024
    "emb_dim": 128,          # scaled down from 768
    "n_heads": 4,
    "n_layers": 2,
    "drop_rate": 0.1,
    "qkv_bias": False,
}

BATCH = 2
SEQ = 8

# bf16 streaming of weights/activations (f32 MXU accumulation, f32 logits).
# Set to jnp.float32 to recover tight numerics (then tighten the assert).
COMPUTE_DTYPE = jnp.bfloat16

# Row-block cap; rows are M = B*S (MXU-friendly at scale, full-extent at toy).
ROW_TILE_CAP = 256


def _device_caps(compute_dtype):
    """Generation-aware (vocab_tile_cap, vmem_limit_bytes)."""
    try:
        kind = jax.devices()[0].device_kind.lower()
    except Exception:
        kind = ""
    two_byte = jnp.dtype(compute_dtype).itemsize <= 2
    if ("v5e" in kind) or ("v5 lite" in kind) or ("v5lite" in kind):
        # v5e: 16 MiB default scoped VMEM -> raise it; keep tiles moderate.
        return (2048 if two_byte else 1024), 64 * 1024 * 1024
    if "v6" in kind:
        # v6e: 128 MiB physical VMEM -> bigger tiles amortize per-step overhead.
        return (8192 if two_byte else 4096), 64 * 1024 * 1024
    if "v7" in kind:
        # v7x: only 64 MiB VMEM per TensorCore -> stay conservative.
        return 2048, None
    return 2048, None


# --------------------- one-time parameter preparation -----------------------
def prepare_params(tok_emb, pos_emb, w_out, *, compute_dtype=COMPUTE_DTYPE):
    """One-time prep (NOT on the per-call forward path).

    - Casts embeddings / head weight to the streaming dtype.
    - Transposes the PyTorch (V, E) Linear weight to (E, V) so the kernel is a
      plain x @ W matmul (no per-tile transposes of the weight slab).
    - Pads the vocab dim once to a lane-dense multiple of the vocab tile.
    """
    cap, vmem_limit = _device_caps(compute_dtype)
    V, E = w_out.shape
    tn = min(pl.cdiv(V, 128) * 128, cap)
    v_pad = pl.cdiv(V, tn) * tn
    w_t = w_out.T.astype(compute_dtype)                      # (E, V)
    if v_pad != V:
        w_t = jnp.pad(w_t, ((0, 0), (0, v_pad - V)))         # zero cols -> discarded logits
    return {
        "tok_emb": tok_emb.astype(compute_dtype),
        "pos_emb": pos_emb.astype(compute_dtype),
        "w_head_t": w_t,                                     # (E, v_pad)
        "vocab_size": V,
        "vocab_tile": tn,
        "vmem_limit_bytes": vmem_limit,
    }


# ------------------------------ Pallas kernel --------------------------------
def _head_matmul_kernel(x_ref, w_ref, out_ref):
    # x_ref:   (TM, E)  rows of (token + positional) embeddings
    # w_ref:   (E, TN)  resident vocab slice of the output head (pre-transposed)
    # out_ref: (TM, TN) logits tile (f32), lane-dense store
    # Dropout / DummyTransformerBlock / DummyLayerNorm are identities at eval.
    out_ref[...] = jnp.dot(
        x_ref[...], w_ref[...], preferred_element_type=jnp.float32
    ).astype(out_ref.dtype)


# -------------------------------- forward ------------------------------------
def make_dummy_gpt_forward(params):
    tok_emb = params["tok_emb"]
    pos_emb = params["pos_emb"]
    w_head_t = params["w_head_t"]
    V = params["vocab_size"]
    tn = params["vocab_tile"]
    vmem_limit = params["vmem_limit_bytes"]
    E, v_pad = w_head_t.shape

    compiler_kwargs = dict(dimension_semantics=("parallel", "parallel"))
    if vmem_limit is not None:
        compiler_kwargs["vmem_limit_bytes"] = vmem_limit

    @jax.jit
    def forward(in_idx):
        B, S = in_idx.shape
        M = B * S
        # Glue: the embedding gather is data-dependent (no BlockSpec form);
        # the positional add fuses into it under jit.  Dropout / dummy blocks /
        # dummy norm are identities at inference.
        x = (tok_emb[in_idx] + pos_emb[:S][None, :, :]).reshape(M, E)

        tm = min(pl.cdiv(M, 8) * 8, ROW_TILE_CAP)
        m_pad = pl.cdiv(M, tm) * tm
        if m_pad != M:
            x = jnp.pad(x, ((0, m_pad - M), (0, 0)))          # pads activations only

        itemsize = jnp.dtype(x.dtype).itemsize
        cost = pl.CostEstimate(
            flops=2 * m_pad * E * v_pad,
            transcendentals=0,
            bytes_accessed=(x.size + w_head_t.size) * itemsize + m_pad * v_pad * 4,
        )

        logits_pad = pl.pallas_call(
            _head_matmul_kernel,
            out_shape=jax.ShapeDtypeStruct((m_pad, v_pad), jnp.float32),
            grid_spec=pl.GridSpec(
                # vocab outer, rows inner: the (E, TN) weight tile stays
                # resident in VMEM across the inner row axis (one DMA per
                # vocab tile), which is what matters as M grows.
                grid=(v_pad // tn, m_pad // tm),
                in_specs=[
                    pl.BlockSpec((tm, E), lambda j, i: (i, 0)),   # activations
                    pl.BlockSpec((E, tn), lambda j, i: (0, j)),   # resident weight slice
                ],
                out_specs=pl.BlockSpec((tm, tn), lambda j, i: (i, j)),
            ),
            compiler_params=pltpu.CompilerParams(**compiler_kwargs),
            cost_estimate=cost,
        )(x, w_head_t)

        # TODO(synk): for very large B*S, emit bf16 logits to halve writeback.
        return logits_pad[:M, :V].reshape(B, S, V)

    return forward


# ------------------------------- reference -----------------------------------
def dummy_gpt_ref(in_idx, tok_emb, pos_emb, w_out):
    _, S = in_idx.shape
    x = tok_emb[in_idx] + pos_emb[:S][None, :, :]
    # dropout / dummy blocks / dummy norm are identities at eval
    return jnp.einsum("bse,ve->bsv", x, w_out)


# --------------------------------- main ---------------------------------------
if __name__ == "__main__":
    key = jax.random.PRNGKey(0)
    k_tok, k_pos, k_w, k_idx = jax.random.split(key, 4)

    V, Lctx, E = CFG["vocab_size"], CFG["context_length"], CFG["emb_dim"]

    # Deterministic parameter init (nn.Embedding ~ N(0,1); Linear-like scale)
    tok_emb = jax.random.normal(k_tok, (V, E), dtype=jnp.float32)
    pos_emb = jax.random.normal(k_pos, (Lctx, E), dtype=jnp.float32)
    w_out = jax.random.normal(k_w, (V, E), dtype=jnp.float32) * (1.0 / jnp.sqrt(E))

    in_idx = jax.random.randint(k_idx, (BATCH, SEQ), 0, V, dtype=jnp.int32)

    params = prepare_params(tok_emb, pos_emb, w_out)      # one-time prep, off hot path
    forward = make_dummy_gpt_forward(params)

    logits = jax.block_until_ready(forward(in_idx))

    ref = dummy_gpt_ref(in_idx, tok_emb, pos_emb, w_out)
    assert logits.shape == (BATCH, SEQ, V), logits.shape
    # bf16 weight/activation streaming with f32 accumulation: ~1e-2 abs error
    # at E=128.  (With COMPUTE_DTYPE=jnp.float32, tighten to 1e-3.)
    err = float(jnp.max(jnp.abs(logits - ref)))
    assert jnp.allclose(logits, ref, atol=5e-2, rtol=5e-2), err

    print("KERNEL_OK")
</pallas_src>

<mosaic_0001>
module attributes {stable_mosaic.version = 11 : i64} {
  func.func @_head_matmul_kernel(%arg0: i32, %arg1: i32, %arg2: memref<16x128xbf16, #tpu.memory_space<vmem>>, %arg3: memref<128x512xbf16, #tpu.memory_space<vmem>>, %arg4: memref<16x512xf32, #tpu.memory_space<vmem>>) attributes {dimension_semantics = [#tpu.dimension_semantics<parallel>, #tpu.dimension_semantics<parallel>], iteration_bounds = array<i64: 1, 1>, scalar_prefetch = 0 : i64, scratch_operands = 0 : i64, tpu.core_type = #tpu.core_type<tc>, window_params = [{transform_indices = @transform_0, window_bounds = array<i64: 16, 128>}, {transform_indices = @transform_1, window_bounds = array<i64: 128, 512>}, {transform_indices = @transform_2, window_bounds = array<i64: 16, 512>}]} {
    %c0 = arith.constant 0 : index
    %c0_0 = arith.constant 0 : index
    %0 = vector.load %arg2[%c0, %c0_0] : memref<16x128xbf16, #tpu.memory_space<vmem>>, vector<16x128xbf16>
    %c0_1 = arith.constant 0 : index
    %c0_2 = arith.constant 0 : index
    %1 = vector.load %arg3[%c0_1, %c0_2] : memref<128x512xbf16, #tpu.memory_space<vmem>>, vector<128x512xbf16>
    %cst = arith.constant dense<0.000000e+00> : vector<16x512xf32>
    %2 = tpu.matmul %0, %1, %cst {dimension_numbers = #tpu.dot_dimension_numbers<[1], [0], [0], [1], [0, 0, 1, 1], [], []>} : vector<16x128xbf16>, vector<128x512xbf16>, vector<16x512xf32> -> vector<16x512xf32>
    %c0_3 = arith.constant 0 : index
    %c0_4 = arith.constant 0 : index
    %3 = vector.load %arg4[%c0_3, %c0_4] : memref<16x512xf32, #tpu.memory_space<vmem>>, vector<16x512xf32>
    tpu.vector_store %arg4[%c0_3, %c0_4], %2 {strides = array<i32>} : memref<16x512xf32, #tpu.memory_space<vmem>>, vector<16x512xf32>,
    return
  }
  func.func @transform_0(%arg0: i32, %arg1: i32) -> (i32, i32) {
    %c0_i32 = arith.constant 0 : i32
    %c0_i32_0 = arith.constant 0 : i32
    return %arg1, %c0_i32 : i32, i32
  }
  func.func @transform_1(%arg0: i32, %arg1: i32) -> (i32, i32) {
    %c0_i32 = arith.constant 0 : i32
    %c0_i32_0 = arith.constant 0 : i32
    return %c0_i32, %arg0 : i32, i32
  }
  func.func @transform_2(%arg0: i32, %arg1: i32) -> (i32, i32) {
    %c0_i32 = arith.constant 0 : i32
    return %arg1, %arg0 : i32, i32
  }
}

</mosaic_0001>

<bundles_post_ra>
// kernel: forward.1
= control target key start
LH: loop header
LB: loop body
LE: loop exit
PB: predicated region body
PF: predicated region fallthrough
CT: control target
= control target key end

     0   :  { %v433_v2 = vmov 0   ;;  %s563_s0 = inlined_call_operand.vmem [shape: bf16[16,128], index: 0, kind: input, shape index: {}]   ;;  %s564_s1 = inlined_call_operand.vmem [shape: bf16[128,512], index: 1, kind: input, shape index: {}]   ;;  %s565_s2 = inlined_call_operand.hbm [shape: f32[16,512], index: 2, kind: output, shape index: {}]  }
   0x1   :  { %v360_v0 = vld [vmem:[%s564_s1 + $0x4] ss:$16 sps:$4 sm:$0xff]   ;;  %v362_v1 = vld [vmem:[%s564_s1 + $0xc] ss:$16 sps:$4 sm:$0xff]   ;;  %245 = vmatprep.mubr.bf16.mxu0 %v433_v2  ;;  %288 = vmatprep.mubr.bf16.mxu1 %v433_v2  ;;  %v364_v3 = vld [vmem:[%s564_s1] ss:$16 sps:$4 sm:$0xff]  }
   0x2   :  { %213 = vmatprep.subr.bf16.mxu0 %v360_v0  ;;  %v365_v4 = vld [vmem:[%s564_s1 + $0x8] ss:$16 sps:$4 sm:$0xff]   ;;  %256 = vmatprep.subr.bf16.mxu1 %v362_v1  ;;  %v366_v5 = vld [vmem:[%s564_s1 + $0x24] ss:$16 sps:$4 sm:$0xff]   ;;  %v368_v6 = vld [vmem:[%s564_s1 + $0x2c] ss:$16 sps:$4 sm:$0xff]  }
   0x3   :  { %214 = vmatpush1.bf16.msra.mxu0 %v364_v3  ;;  %257 = vmatpush1.bf16.msra.mxu1 %v365_v4  ;;  %v370_v7 = vld [vmem:[%s564_s1 + $0x20] ss:$16 sps:$4 sm:$0xff]   ;;  %v371_v8 = vld [vmem:[%s564_s1 + $0x28] ss:$16 sps:$4 sm:$0xff]   ;;  %v372_v9 = vld [vmem:[%s564_s1 + $0x44] ss:$16 sps:$4 sm:$0xff]  }
   0x4   :  { %215 = vmatprep.subr.bf16.mxu0 %v366_v5  ;;  %258 = vmatprep.subr.bf16.mxu1 %v368_v6  ;;  %v374_v10 = vld [vmem:[%s564_s1 + $0x4c] ss:$16 sps:$4 sm:$0xff]   ;;  %v376_v11 = vld [vmem:[%s564_s1 + $0x40] ss:$16 sps:$4 sm:$0xff]   ;;  %v377_v12 = vld [vmem:[%s564_s1 + $0x48] ss:$16 sps:$4 sm:$0xff]  }
   0x5   :  { %v378_v13 = vld [vmem:[%s564_s1 + $0x64] ss:$16 sps:$4 sm:$0xff]   ;;  %v380_v14 = vld [vmem:[%s564_s1 + $0x6c] ss:$16 sps:$4 sm:$0xff]   ;;  %v382_v15 = vld [vmem:[%s564_s1 + $0x60] ss:$16 sps:$4 sm:$0xff]  }
   0x6   :  { %v383_v16 = vld [vmem:[%s564_s1 + $0x68] ss:$16 sps:$4 sm:$0xff]   ;;  %v384_v17 = vld [vmem:[%s564_s1 + $0x84] ss:$16 sps:$4 sm:$0xff]   ;;  %v386_v18 = vld [vmem:[%s564_s1 + $0x8c] ss:$16 sps:$4 sm:$0xff]  }
   0x7   :  { %216 = vmatpush1.bf16.msra.mxu0 %v370_v7  ;;  %259 = vmatpush1.bf16.msra.mxu1 %v371_v8  ;;  %v388_v19 = vld [vmem:[%s564_s1 + $0x80] ss:$16 sps:$4 sm:$0xff]   ;;  %v389_v20 = vld [vmem:[%s564_s1 + $0x88] ss:$16 sps:$4 sm:$0xff]   ;;  %v390_v21 = vld [vmem:[%s564_s1 + $0xa4] ss:$16 sps:$4 sm:$0xff]  }
   0x8   :  { %217 = vmatprep.subr.bf16.mxu0 %v372_v9  ;;  %260 = vmatprep.subr.bf16.mxu1 %v374_v10  ;;  %v392_v22 = vld [vmem:[%s564_s1 + $0xac] ss:$16 sps:$4 sm:$0xff]   ;;  %v394_v23 = vld [vmem:[%s564_s1 + $0xa0] ss:$16 sps:$4 sm:$0xff]   ;;  %v395_v24 = vld [vmem:[%s564_s1 + $0xa8] ss:$16 sps:$4 sm:$0xff]  }
   0x9   :  { %v396_v25 = vld [vmem:[%s564_s1 + $0xc4] ss:$16 sps:$4 sm:$0xff]   ;;  %v398_v26 = vld [vmem:[%s564_s1 + $0xcc] ss:$16 sps:$4 sm:$0xff]  }
   0xb   :  { %218 = vmatpush1.bf16.msra.mxu0 %v376_v11  ;;  %261 = vmatpush1.bf16.msra.mxu1 %v377_v12 }
   0xc   :  { %219 = vmatprep.subr.bf16.mxu0 %v378_v13  ;;  %262 = vmatprep.subr.bf16.mxu1 %v380_v14 }
   0xf   :  { %220 = vmatpush1.bf16.msra.mxu0 %v382_v15  ;;  %263 = vmatpush1.bf16.msra.mxu1 %v383_v16 }
  0x10   :  { %221 = vmatprep.subr.bf16.mxu0 %v384_v17  ;;  %264 = vmatprep.subr.bf16.mxu1 %v386_v18 }
  0x13   :  { %222 = vmatpush1.bf16.msra.mxu0 %v388_v19  ;;  %265 = vmatpush1.bf16.msra.mxu1 %v389_v20 }
  0x14   :  { %223 = vmatprep.subr.bf16.mxu0 %v390_v21  ;;  %266 = vmatprep.subr.bf16.mxu1 %v392_v22 }
  0x15   :  { %7 = vsyncpa [#allocation3], 0  ;;  %v400_v27 = vld [vmem:[%s564_s1 + $0xc0] ss:$16 sps:$4 sm:$0xff]   ;;  %v401_v28 = vld [vmem:[%s564_s1 + $0xc8] ss:$16 sps:$4 sm:$0xff]  }
  0x16   :  { %v402_v29 = vld [vmem:[%s564_s1 + $0xe4] ss:$16 sps:$4 sm:$0xff]   ;;  %v404_v30 = vld [vmem:[%s564_s1 + $0xec] ss:$16 sps:$4 sm:$0xff]   ;;  %v406_v31 = vld [vmem:[%s564_s1 + $0xe0] ss:$16 sps:$4 sm:$0xff]  }
  0x17   :  { %224 = vmatpush1.bf16.msra.mxu0 %v394_v23  ;;  %267 = vmatpush1.bf16.msra.mxu1 %v395_v24  ;;  %v407_v32 = vld [vmem:[%s564_s1 + $0xe8] ss:$16 sps:$4 sm:$0xff]   ;;  %v408_v33 = vld [vmem:[%s563_s0] sm:$0xff]   ;;  %s434_s19 = smov [#allocation2]  }
  0x18   :  { %225 = vmatprep.subr.bf16.mxu0 %v396_v25  ;;  %268 = vmatprep.subr.bf16.mxu1 %v398_v26  ;;  %s312_s20 = sshll.u32 %s434_s19, 4  ;;  %s313_s20 = int_to_ptr.vmem [resolvable:$true] %s312_s20 }
  0x19   :  { %s409_s0 = scalar_lea.vmem %s313_s20, 1024  ;;  %p414_p1 = scmp.lt.s32.totalorder %s313_s20, %s313_s20 }
  0x1a   :  { %p410_p0 = scmp.ne.s32.totalorder %s313_s20, %s409_s0  ;;  %p415_p2 = scmp.lt.s32.totalorder %s409_s0, %s409_s0 }
  0x1b   :  { %226 = vmatpush1.bf16.msra.mxu0 %v400_v27  ;;  %269 = vmatpush1.bf16.msra.mxu1 %v401_v28 }
  0x1c   :  { %227 = vmatprep.subr.bf16.mxu0 %v402_v29  ;;  %270 = vmatprep.subr.bf16.mxu1 %v404_v30  ;;  %p416_p3 = por %p415_p2, %p414_p1 }
  0x1e   :  { %p417_p4 = pnand %p416_p3, %p410_p0 }
  0x1f   :  { %228 = vmatpush1.bf16.msra.mxu0 %v406_v31  ;;  %271 = vmatpush1.bf16.msra.mxu1 %v407_v32 }
  0x22   :  { %246 = vmatmul.mubr.bf16.vlgmr.msra.gmra.mrb[0].mxu0 %v408_v33  ;;  %289 = vmatmul.mubr.bf16.vlgmr.msra.gmra.mrb[0].mxu1 %v408_v33 }
  0xf5   :  { %v247_v34 = vpop.f32.mrb[0].mxu0  ;;  %v290_v35 = vpop.f32.mrb[0].mxu1 }
  0xf6   :  { %299 = vst [vmem:[#allocation2] sm:$0xff] %v247_v34  ;;  %301 = vst [vmem:[#allocation2 + $0x10] sm:$0xff] %v290_v35  ;;  %v249_v36 = vpop.f32.mrb[1].mxu0  ;;  %v292_v37 = vpop.f32.mrb[1].mxu1 }
  0xf7   :  { %300 = vst [vmem:[#allocation2 + $0x8] sm:$0xff] %v249_v36  ;;  %302 = vst [vmem:[#allocation2 + $0x18] sm:$0xff] %v292_v37  ;;  %v251_v38 = vpop.f32.mrb[2].mxu0  ;;  %v294_v39 = vpop.f32.mrb[2].mxu1 }
  0xf8   :  { %303 = vst [vmem:[#allocation2 + $0x20] sm:$0xff] %v251_v38  ;;  %305 = vst [vmem:[#allocation2 + $0x30] sm:$0xff] %v294_v39  ;;  %v253_v40 = vpop.f32.mrb[3].mxu0  ;;  %v296_v41 = vpop.f32.mrb[3].mxu1 }
  0xf9   :  { %304 = vst [vmem:[#allocation2 + $0x28] sm:$0xff] %v253_v40  ;;  %306 = vst [vmem:[#allocation2 + $0x38] sm:$0xff] %v296_v41 }
  0xfa   :  { %420 = shalt.err (!%p417_p4)
}
  0xfb   :  { %s421_s22 = scalar_lea.hbm %s565_s2, 1024 }
  0xfc   :  { %p422_p5 = scmp.ne.s32.totalorder %s565_s2, %s421_s22  ;;  %p425_p6 = scmp.lt.u32.totalorder %s421_s22, %s565_s2 }
  0xfe   :  { %p427_p7 = pnand %p425_p6, %p422_p5 }
 0x100   :  { %430 = shalt.err (!%p427_p7)
}
 0x101   :  { %s435_s27 = smov 512   ;;  %s436_s28 = smov 32  }
 0x102   :  { %318 = dma.vmem_to_hbm [thread:$0]  %s313_s20, 1024, %s565_s2, [#allocation3], %s435_s27, %s435_s27, %s436_s28  }
 0x103   :  { %431 = dma.done.wait [#allocation3], 1024  }
 0x104   :  { %432 = vsyncadd [#allocation3], 4294966272 }
 0x105   :  { %322 = vsyncpa [#allocation3], 1 }

</bundles_post_ra>
